<compile_context>
chip_gen: v6e
topology: v6e:2x2x1
jax: 0.10.0
libtpu: 0.0.40
codegen_flags: <defaults>
</compile_context>

<pallas_src>
import functools

import jax
import jax.numpy as jnp
from jax.experimental import pallas as pl
from jax.experimental.pallas import tpu as pltpu

SUBLANE = 8    # f32 sublane tile
LANE = 128     # lane width


def _actor_kernel(x_ref, wih_ref, whh_ref, brnn_ref, w12_ref, b12_ref,
                  out_ref, hs_scratch, *, seq, batch_p):
    # ---- Stage 1: input projection for ALL timesteps in one MXU push. ----
    # Pre-activations are written straight into hs_scratch and later
    # overwritten in place by the recurrence (no separate pre_scratch buffer).
    hs_scratch[...] = (
        jnp.dot(x_ref[...], wih_ref[...], preferred_element_type=jnp.float32)
        + brnn_ref[...]
    )

    # ---- Stage 2: the only truly serial part of the network. ----
    # h_t = tanh(pre_t + h_{t-1} @ W_hh^T),  h_0 = 0  (PyTorch default).
    whh = whh_ref[...]  # hoist the weight load out of the loop
    hidden = whh.shape[1]
    # TODO(synk): hold W_hh staged in the MXU across steps via
    # pltpu.matmul_push_rhs / matmul_acc_lhs / matmul_pop once that path is
    # validated for sub-128 tiles; jnp.dot re-pushes the same RHS every step.

    def step(t, h_prev):
        row = pl.multiple_of(t * batch_p, batch_p)  # sublane-aligned offset
        pre_t = hs_scratch[pl.ds(row, batch_p), :]
        h_new = jnp.tanh(
            pre_t + jnp.dot(h_prev, whh, preferred_element_type=jnp.float32))
        hs_scratch[pl.ds(row, batch_p), :] = h_new  # overwrite rows in place
        return h_new

    h0 = jnp.zeros((batch_p, hidden), jnp.float32)
    jax.lax.fori_loop(0, seq, step, h0, unroll=min(seq, 8))

    # ---- Stage 3: fused fc1+fc2 affine map applied once to all hidden
    #      states, followed by a single lane-dense output store. ----
    out_ref[...] = (
        jnp.dot(hs_scratch[...], w12_ref[...],
                preferred_element_type=jnp.float32)
        + b12_ref[...]
    ).astype(out_ref.dtype)


def actor_net_forward(x, params):
    """x: (seq, batch, input_dim) float32.  Returns (seq, batch, output_dim)."""
    seq, batch, input_dim = x.shape
    wih_t, whh_t, bih, bhh, w1_t, b1, w2_t, b2 = params
    hidden = wih_t.shape[1]
    output_dim = w2_t.shape[1]

    # Pad batch up to the f32 sublane tile so every vector op runs at full
    # sublane occupancy and in-kernel row slices stay tile-aligned.
    batch_p = max(SUBLANE, ((batch + SUBLANE - 1) // SUBLANE) * SUBLANE)
    if batch_p != batch:
        x = jnp.pad(x, ((0, 0), (0, batch_p - batch), (0, 0)))
    sb = seq * batch_p
    x_flat = x.reshape(sb, input_dim)

    # Fuse the two RNN biases, and fc1/fc2 into one affine map (there is no
    # nonlinearity between them in the module, so this is algebraically exact).
    b_rnn = (bih + bhh).astype(jnp.float32)
    w12 = (w1_t @ w2_t).astype(jnp.float32)
    b12 = (b1 @ w2_t + b2).astype(jnp.float32)

    # Pad the output (lane) dim to a multiple of 128 so the final store is a
    # lane-dense unmasked vst; the padded columns are exactly zero.
    out_p = max(LANE, ((output_dim + LANE - 1) // LANE) * LANE)
    w12_p = jnp.zeros((hidden, out_p), jnp.float32).at[:, :output_dim].set(w12)
    b12_p = jnp.zeros((1, out_p), jnp.float32).at[:, :output_dim].set(b12)

    vmem = pl.BlockSpec(memory_space=pltpu.MemorySpace.VMEM)
    kernel = functools.partial(_actor_kernel, seq=seq, batch_p=batch_p)

    in_bytes = 4 * (x_flat.size + wih_t.size + whh_t.size + b_rnn.size
                    + w12_p.size + b12_p.size)
    out_bytes = 4 * sb * out_p
    flops = 2 * sb * (input_dim * hidden + hidden * hidden + hidden * out_p)

    # TODO(synk): for large batch on v7x (2 TCs, 64 MiB VMEM), add a leading
    # "parallel" grid axis over batch_p tiles; on single-core v5e/v6e keep
    # this single-invocation form (a grid is only a serial loop there).
    # TODO(synk): if seq*batch grows large, give x_flat a row-tiled BlockSpec
    # so Stage 1 overlaps its HBM->VMEM DMA instead of whole-array residency.
    out_flat = pl.pallas_call(
        kernel,
        out_shape=jax.ShapeDtypeStruct((sb, out_p), jnp.float32),
        in_specs=[vmem] * 6,
        out_specs=vmem,
        scratch_shapes=[
            # pre-activations, overwritten in place with hidden states
            pltpu.VMEM((sb, hidden), jnp.float32),
        ],
        compiler_params=pltpu.CompilerParams(
            vmem_limit_bytes=32 * 1024 * 1024),
        cost_estimate=pl.CostEstimate(
            flops=int(flops),
            transcendentals=int(sb * hidden),
            bytes_accessed=int(in_bytes + out_bytes)),
    )(x_flat, wih_t, whh_t, b_rnn, w12_p, b12_p)

    # NOTE: padded batch rows / padded output lanes must never be consumed
    # before this slice.
    return out_flat.reshape(seq, batch_p, out_p)[:, :batch, :output_dim]


def init_params(key, input_dim, hidden_dim, output_dim):
    """Deterministic init mimicking PyTorch's U(-1/sqrt(fan), 1/sqrt(fan))."""
    ks = jax.random.split(key, 8)

    def u(k, shape, fan):
        bound = 1.0 / jnp.sqrt(jnp.float32(fan))
        return jax.random.uniform(k, shape, jnp.float32, -bound, bound)

    # Stored transposed so the kernel can do (rows, in) @ (in, out).
    wih_t = u(ks[0], (input_dim, hidden_dim), hidden_dim)
    whh_t = u(ks[1], (hidden_dim, hidden_dim), hidden_dim)
    bih = u(ks[2], (1, hidden_dim), hidden_dim)
    bhh = u(ks[3], (1, hidden_dim), hidden_dim)
    w1_t = u(ks[4], (hidden_dim, hidden_dim), hidden_dim)
    b1 = u(ks[5], (1, hidden_dim), hidden_dim)
    w2_t = u(ks[6], (hidden_dim, output_dim), hidden_dim)
    b2 = u(ks[7], (1, output_dim), hidden_dim)
    return (wih_t, whh_t, bih, bhh, w1_t, b1, w2_t, b2)


def actor_net_ref(x, params):
    """Pure-JAX reference matching the PyTorch module (unfused fc1/fc2)."""
    wih_t, whh_t, bih, bhh, w1_t, b1, w2_t, b2 = params
    seq, batch, _ = x.shape
    hidden = wih_t.shape[1]

    def step(h, x_t):
        h_new = jnp.tanh(x_t @ wih_t + bih + h @ whh_t + bhh)
        return h_new, h_new

    h0 = jnp.zeros((batch, hidden), jnp.float32)
    _, hs = jax.lax.scan(step, h0, x)  # (seq, batch, hidden)
    y = hs @ w1_t + b1
    y = y @ w2_t + b2
    return y


if __name__ == "__main__":
    seq_len, batch, input_dim, hidden_dim, output_dim = 8, 4, 16, 32, 8

    key = jax.random.PRNGKey(0)
    k_x, k_p = jax.random.split(key)
    x = jax.random.normal(k_x, (seq_len, batch, input_dim), jnp.float32)
    params = init_params(k_p, input_dim, hidden_dim, output_dim)

    out = actor_net_forward(x, params)
    out = jax.block_until_ready(out)

    ref = actor_net_ref(x, params)
    assert out.shape == (seq_len, batch, output_dim)
    assert jnp.allclose(out, ref, atol=1e-4, rtol=1e-4), "mismatch vs JAX reference"

    print("KERNEL_OK")
</pallas_src>

<mosaic_0001>
module attributes {stable_mosaic.version = 11 : i64} {
  func.func @_actor_kernel(%arg0: memref<64x16xf32, #tpu.memory_space<vmem>>, %arg1: memref<16x32xf32, #tpu.memory_space<vmem>>, %arg2: memref<32x32xf32, #tpu.memory_space<vmem>>, %arg3: memref<1x32xf32, #tpu.memory_space<vmem>>, %arg4: memref<32x128xf32, #tpu.memory_space<vmem>>, %arg5: memref<1x128xf32, #tpu.memory_space<vmem>>, %arg6: memref<64x128xf32, #tpu.memory_space<vmem>>, %arg7: memref<64x32xf32, #tpu.memory_space<vmem>>) attributes {dimension_semantics = [], scalar_prefetch = 0 : i64, scratch_operands = 1 : i64, tpu.core_type = #tpu.core_type<tc>} {
    %c0 = arith.constant 0 : index
    %c0_0 = arith.constant 0 : index
    %0 = vector.load %arg0[%c0, %c0_0] : memref<64x16xf32, #tpu.memory_space<vmem>>, vector<64x16xf32>
    %c0_1 = arith.constant 0 : index
    %c0_2 = arith.constant 0 : index
    %1 = vector.load %arg1[%c0_1, %c0_2] : memref<16x32xf32, #tpu.memory_space<vmem>>, vector<16x32xf32>
    %cst = arith.constant dense<0.000000e+00> : vector<64x32xf32>
    %2 = tpu.matmul %0, %1, %cst {dimension_numbers = #tpu.dot_dimension_numbers<[1], [0], [0], [1], [0, 0, 1, 1], [], []>} : vector<64x16xf32>, vector<16x32xf32>, vector<64x32xf32> -> vector<64x32xf32>
    %c0_3 = arith.constant 0 : index
    %c0_4 = arith.constant 0 : index
    %3 = vector.load %arg3[%c0_3, %c0_4] : memref<1x32xf32, #tpu.memory_space<vmem>>, vector<1x32xf32>
    %4 = vector.broadcast %3 : vector<1x32xf32> to vector<64x32xf32>
    %5 = arith.addf %2, %4 : vector<64x32xf32>
    %c0_5 = arith.constant 0 : index
    %c0_6 = arith.constant 0 : index
    %6 = vector.load %arg7[%c0_5, %c0_6] : memref<64x32xf32, #tpu.memory_space<vmem>>, vector<64x32xf32>
    tpu.vector_store %arg7[%c0_5, %c0_6], %5 {strides = array<i32>} : memref<64x32xf32, #tpu.memory_space<vmem>>, vector<64x32xf32>,
    %c0_7 = arith.constant 0 : index
    %c0_8 = arith.constant 0 : index
    %7 = vector.load %arg2[%c0_7, %c0_8] : memref<32x32xf32, #tpu.memory_space<vmem>>, vector<32x32xf32>
    %cst_9 = arith.constant 0.000000e+00 : f32
    %8 = vector.broadcast %cst_9 : f32 to vector<8x32xf32>
    %c0_i32 = arith.constant 0 : i32
    %c8_i32 = arith.constant 8 : i32
    %9 = arith.muli %c0_i32, %c8_i32 : i32
    %10 = tpu.assume_multiple %9, 8 : i32
    %11 = arith.index_cast %10 : i32 to index
    %c0_10 = arith.constant 0 : index
    %12 = vector.load %arg7[%11, %c0_10] : memref<64x32xf32, #tpu.memory_space<vmem>>, vector<8x32xf32>
    %cst_11 = arith.constant dense<0.000000e+00> : vector<8x32xf32>
    %13 = tpu.matmul %8, %7, %cst_11 {dimension_numbers = #tpu.dot_dimension_numbers<[1], [0], [0], [1], [0, 0, 1, 1], [], []>} : vector<8x32xf32>, vector<32x32xf32>, vector<8x32xf32> -> vector<8x32xf32>
    %14 = arith.addf %12, %13 : vector<8x32xf32>
    %15 = math.tanh %14 : vector<8x32xf32>
    %16 = arith.index_cast %10 : i32 to index
    %c0_12 = arith.constant 0 : index
    %17 = vector.load %arg7[%16, %c0_12] : memref<64x32xf32, #tpu.memory_space<vmem>>, vector<8x32xf32>
    tpu.vector_store %arg7[%16, %c0_12], %15 {strides = array<i32>} : memref<64x32xf32, #tpu.memory_space<vmem>>, vector<8x32xf32>,
    %c1_i32 = arith.constant 1 : i32
    %c8_i32_13 = arith.constant 8 : i32
    %18 = arith.muli %c1_i32, %c8_i32_13 : i32
    %19 = tpu.assume_multiple %18, 8 : i32
    %20 = arith.index_cast %19 : i32 to index
    %c0_14 = arith.constant 0 : index
    %21 = vector.load %arg7[%20, %c0_14] : memref<64x32xf32, #tpu.memory_space<vmem>>, vector<8x32xf32>
    %cst_15 = arith.constant dense<0.000000e+00> : vector<8x32xf32>
    %22 = tpu.matmul %15, %7, %cst_15 {dimension_numbers = #tpu.dot_dimension_numbers<[1], [0], [0], [1], [0, 0, 1, 1], [], []>} : vector<8x32xf32>, vector<32x32xf32>, vector<8x32xf32> -> vector<8x32xf32>
    %23 = arith.addf %21, %22 : vector<8x32xf32>
    %24 = math.tanh %23 : vector<8x32xf32>
    %25 = arith.index_cast %19 : i32 to index
    %c0_16 = arith.constant 0 : index
    %26 = vector.load %arg7[%25, %c0_16] : memref<64x32xf32, #tpu.memory_space<vmem>>, vector<8x32xf32>
    tpu.vector_store %arg7[%25, %c0_16], %24 {strides = array<i32>} : memref<64x32xf32, #tpu.memory_space<vmem>>, vector<8x32xf32>,
    %c2_i32 = arith.constant 2 : i32
    %c8_i32_17 = arith.constant 8 : i32
    %27 = arith.muli %c2_i32, %c8_i32_17 : i32
    %28 = tpu.assume_multiple %27, 8 : i32
    %29 = arith.index_cast %28 : i32 to index
    %c0_18 = arith.constant 0 : index
    %30 = vector.load %arg7[%29, %c0_18] : memref<64x32xf32, #tpu.memory_space<vmem>>, vector<8x32xf32>
    %cst_19 = arith.constant dense<0.000000e+00> : vector<8x32xf32>
    %31 = tpu.matmul %24, %7, %cst_19 {dimension_numbers = #tpu.dot_dimension_numbers<[1], [0], [0], [1], [0, 0, 1, 1], [], []>} : vector<8x32xf32>, vector<32x32xf32>, vector<8x32xf32> -> vector<8x32xf32>
    %32 = arith.addf %30, %31 : vector<8x32xf32>
    %33 = math.tanh %32 : vector<8x32xf32>
    %34 = arith.index_cast %28 : i32 to index
    %c0_20 = arith.constant 0 : index
    %35 = vector.load %arg7[%34, %c0_20] : memref<64x32xf32, #tpu.memory_space<vmem>>, vector<8x32xf32>
    tpu.vector_store %arg7[%34, %c0_20], %33 {strides = array<i32>} : memref<64x32xf32, #tpu.memory_space<vmem>>, vector<8x32xf32>,
    %c3_i32 = arith.constant 3 : i32
    %c8_i32_21 = arith.constant 8 : i32
    %36 = arith.muli %c3_i32, %c8_i32_21 : i32
    %37 = tpu.assume_multiple %36, 8 : i32
    %38 = arith.index_cast %37 : i32 to index
    %c0_22 = arith.constant 0 : index
    %39 = vector.load %arg7[%38, %c0_22] : memref<64x32xf32, #tpu.memory_space<vmem>>, vector<8x32xf32>
    %cst_23 = arith.constant dense<0.000000e+00> : vector<8x32xf32>
    %40 = tpu.matmul %33, %7, %cst_23 {dimension_numbers = #tpu.dot_dimension_numbers<[1], [0], [0], [1], [0, 0, 1, 1], [], []>} : vector<8x32xf32>, vector<32x32xf32>, vector<8x32xf32> -> vector<8x32xf32>
    %41 = arith.addf %39, %40 : vector<8x32xf32>
    %42 = math.tanh %41 : vector<8x32xf32>
    %43 = arith.index_cast %37 : i32 to index
    %c0_24 = arith.constant 0 : index
    %44 = vector.load %arg7[%43, %c0_24] : memref<64x32xf32, #tpu.memory_space<vmem>>, vector<8x32xf32>
    tpu.vector_store %arg7[%43, %c0_24], %42 {strides = array<i32>} : memref<64x32xf32, #tpu.memory_space<vmem>>, vector<8x32xf32>,
    %c4_i32 = arith.constant 4 : i32
    %c8_i32_25 = arith.constant 8 : i32
    %45 = arith.muli %c4_i32, %c8_i32_25 : i32
    %46 = tpu.assume_multiple %45, 8 : i32
    %47 = arith.index_cast %46 : i32 to index
    %c0_26 = arith.constant 0 : index
    %48 = vector.load %arg7[%47, %c0_26] : memref<64x32xf32, #tpu.memory_space<vmem>>, vector<8x32xf32>
    %cst_27 = arith.constant dense<0.000000e+00> : vector<8x32xf32>
    %49 = tpu.matmul %42, %7, %cst_27 {dimension_numbers = #tpu.dot_dimension_numbers<[1], [0], [0], [1], [0, 0, 1, 1], [], []>} : vector<8x32xf32>, vector<32x32xf32>, vector<8x32xf32> -> vector<8x32xf32>
    %50 = arith.addf %48, %49 : vector<8x32xf32>
    %51 = math.tanh %50 : vector<8x32xf32>
    %52 = arith.index_cast %46 : i32 to index
    %c0_28 = arith.constant 0 : index
    %53 = vector.load %arg7[%52, %c0_28] : memref<64x32xf32, #tpu.memory_space<vmem>>, vector<8x32xf32>
    tpu.vector_store %arg7[%52, %c0_28], %51 {strides = array<i32>} : memref<64x32xf32, #tpu.memory_space<vmem>>, vector<8x32xf32>,
    %c5_i32 = arith.constant 5 : i32
    %c8_i32_29 = arith.constant 8 : i32
    %54 = arith.muli %c5_i32, %c8_i32_29 : i32
    %55 = tpu.assume_multiple %54, 8 : i32
    %56 = arith.index_cast %55 : i32 to index
    %c0_30 = arith.constant 0 : index
    %57 = vector.load %arg7[%56, %c0_30] : memref<64x32xf32, #tpu.memory_space<vmem>>, vector<8x32xf32>
    %cst_31 = arith.constant dense<0.000000e+00> : vector<8x32xf32>
    %58 = tpu.matmul %51, %7, %cst_31 {dimension_numbers = #tpu.dot_dimension_numbers<[1], [0], [0], [1], [0, 0, 1, 1], [], []>} : vector<8x32xf32>, vector<32x32xf32>, vector<8x32xf32> -> vector<8x32xf32>
    %59 = arith.addf %57, %58 : vector<8x32xf32>
    %60 = math.tanh %59 : vector<8x32xf32>
    %61 = arith.index_cast %55 : i32 to index
    %c0_32 = arith.constant 0 : index
    %62 = vector.load %arg7[%61, %c0_32] : memref<64x32xf32, #tpu.memory_space<vmem>>, vector<8x32xf32>
    tpu.vector_store %arg7[%61, %c0_32], %60 {strides = array<i32>} : memref<64x32xf32, #tpu.memory_space<vmem>>, vector<8x32xf32>,
    %c6_i32 = arith.constant 6 : i32
    %c8_i32_33 = arith.constant 8 : i32
    %63 = arith.muli %c6_i32, %c8_i32_33 : i32
    %64 = tpu.assume_multiple %63, 8 : i32
    %65 = arith.index_cast %64 : i32 to index
    %c0_34 = arith.constant 0 : index
    %66 = vector.load %arg7[%65, %c0_34] : memref<64x32xf32, #tpu.memory_space<vmem>>, vector<8x32xf32>
    %cst_35 = arith.constant dense<0.000000e+00> : vector<8x32xf32>
    %67 = tpu.matmul %60, %7, %cst_35 {dimension_numbers = #tpu.dot_dimension_numbers<[1], [0], [0], [1], [0, 0, 1, 1], [], []>} : vector<8x32xf32>, vector<32x32xf32>, vector<8x32xf32> -> vector<8x32xf32>
    %68 = arith.addf %66, %67 : vector<8x32xf32>
    %69 = math.tanh %68 : vector<8x32xf32>
    %70 = arith.index_cast %64 : i32 to index
    %c0_36 = arith.constant 0 : index
    %71 = vector.load %arg7[%70, %c0_36] : memref<64x32xf32, #tpu.memory_space<vmem>>, vector<8x32xf32>
    tpu.vector_store %arg7[%70, %c0_36], %69 {strides = array<i32>} : memref<64x32xf32, #tpu.memory_space<vmem>>, vector<8x32xf32>,
    %c7_i32 = arith.constant 7 : i32
    %c8_i32_37 = arith.constant 8 : i32
    %72 = arith.muli %c7_i32, %c8_i32_37 : i32
    %73 = tpu.assume_multiple %72, 8 : i32
    %74 = arith.index_cast %73 : i32 to index
    %c0_38 = arith.constant 0 : index
    %75 = vector.load %arg7[%74, %c0_38] : memref<64x32xf32, #tpu.memory_space<vmem>>, vector<8x32xf32>
    %cst_39 = arith.constant dense<0.000000e+00> : vector<8x32xf32>
    %76 = tpu.matmul %69, %7, %cst_39 {dimension_numbers = #tpu.dot_dimension_numbers<[1], [0], [0], [1], [0, 0, 1, 1], [], []>} : vector<8x32xf32>, vector<32x32xf32>, vector<8x32xf32> -> vector<8x32xf32>
    %77 = arith.addf %75, %76 : vector<8x32xf32>
    %78 = math.tanh %77 : vector<8x32xf32>
    %79 = arith.index_cast %73 : i32 to index
    %c0_40 = arith.constant 0 : index
    %80 = vector.load %arg7[%79, %c0_40] : memref<64x32xf32, #tpu.memory_space<vmem>>, vector<8x32xf32>
    tpu.vector_store %arg7[%79, %c0_40], %78 {strides = array<i32>} : memref<64x32xf32, #tpu.memory_space<vmem>>, vector<8x32xf32>,
    %c8_i32_41 = arith.constant 8 : i32
    %c0_42 = arith.constant 0 : index
    %c0_43 = arith.constant 0 : index
    %81 = vector.load %arg7[%c0_42, %c0_43] : memref<64x32xf32, #tpu.memory_space<vmem>>, vector<64x32xf32>
    %c0_44 = arith.constant 0 : index
    %c0_45 = arith.constant 0 : index
    %82 = vector.load %arg4[%c0_44, %c0_45] : memref<32x128xf32, #tpu.memory_space<vmem>>, vector<32x128xf32>
    %cst_46 = arith.constant dense<0.000000e+00> : vector<64x128xf32>
    %83 = tpu.matmul %81, %82, %cst_46 {dimension_numbers = #tpu.dot_dimension_numbers<[1], [0], [0], [1], [0, 0, 1, 1], [], []>} : vector<64x32xf32>, vector<32x128xf32>, vector<64x128xf32> -> vector<64x128xf32>
    %c0_47 = arith.constant 0 : index
    %c0_48 = arith.constant 0 : index
    %84 = vector.load %arg5[%c0_47, %c0_48] : memref<1x128xf32, #tpu.memory_space<vmem>>, vector<1x128xf32>
    %85 = vector.broadcast %84 : vector<1x128xf32> to vector<64x128xf32>
    %86 = arith.addf %83, %85 : vector<64x128xf32>
    %c0_49 = arith.constant 0 : index
    %c0_50 = arith.constant 0 : index
    %87 = vector.load %arg6[%c0_49, %c0_50] : memref<64x128xf32, #tpu.memory_space<vmem>>, vector<64x128xf32>
    tpu.vector_store %arg6[%c0_49, %c0_50], %86 {strides = array<i32>} : memref<64x128xf32, #tpu.memory_space<vmem>>, vector<64x128xf32>,
    return
  }
}

</mosaic_0001>

<bundles_post_ra>
// kernel: tpu_custom_call.1
= control target key start
LH: loop header
LB: loop body
LE: loop exit
PB: predicated region body
PF: predicated region fallthrough
CT: control target
= control target key end

     0   :  { %vm41_vm0 = vcmask 130048   ;;  %s1478_s0 = inlined_call_operand.vmem [shape: f32[64,16], index: 0, kind: input, shape index: {}]   ;;  %s1479_s1 = inlined_call_operand.vmem [shape: f32[16,32], index: 1, kind: input, shape index: {}]   ;;  %s1480_s2 = inlined_call_operand.vmem [shape: f32[32,32], index: 2, kind: input, shape index: {}]   ;;  %s1481_s3 = inlined_call_operand.vmem [shape: f32[1,32], index: 3, kind: input, shape index: {}]   ;;  %s1482_s4 = inlined_call_operand.vmem [shape: f32[32,128], index: 4, kind: input, shape index: {}]   ;;  %s1483_s5 = inlined_call_operand.vmem [shape: f32[1,128], index: 5, kind: input, shape index: {}]   ;;  %s1484_s6 = inlined_call_operand.hbm [shape: f32[64,128], index: 6, kind: output, shape index: {}]  }
   0x1   :  { %v33_v0 = vld [vmem:[%s1479_s1 + $0x8] sm:$0xff]  ;;  %v32_v1 = vld [vmem:[%s1479_s1] sm:$0xff] }
   0x2   :  { %v24_v2 = vld [vmem:[%s1478_s0] sm:$0xff]  ;;  %1066 = vmatprep.subr.mxu0 %v33_v0  ;;  %1190 = vmatprep.subr.mxu1 %v33_v0  ;;  %v25_v3 = vld [vmem:[%s1478_s0 + $0x8] sm:$0xff] }
   0x3   :  { %1067 = vmatpush3.msra.mxu0 %v33_v0  ;;  %1192 = vmatpush3.msra.mxu1 %v33_v0  ;;  %v28_v4 = vld [vmem:[%s1478_s0 + $0x20] sm:$0xff]  ;;  %v29_v5 = vld [vmem:[%s1478_s0 + $0x28] sm:$0xff] }
   0x4   :  { %1068 = vmatprep.subr.mxu0 %v32_v1  ;;  %1070 = vmatprep.mubr.msk.f32.mxu0 %vm41_vm0, %v24_v2 }
   0x5   :  { %1069 = vmatpush3.msra.mxu0 %v32_v1  ;;  %1191 = vmatprep.subr.mxu1 %v32_v1 }
   0x6   :  { %11 = vsyncpa [#allocation4], 0  ;;  %1071 = vmatmul.mubr.msk.f32.vlgmr.msra.gmra.mxu0 %vm41_vm0, %v25_v3  ;;  %1193 = vmatpush3.msra.mxu1 %v32_v1  ;;  %v1300_v6 = vld [vmem:[%s1480_s2 + $0x18] sm:$0xff]  ;;  %v30_v7 = vld [vmem:[%s1478_s0 + $0x30] sm:$0xff]  ;;  %v1237_v8 = vmov 0.0   ;;  %vm1238_vm1 = vmmov 0  }
   0x7   :  { %1076 = vmatprep.mubr.msk.f32.mxu1 %vm41_vm0, %v28_v4  ;;  %1082 = vmatprep.subr.mxu1 %v1237_v8  ;;  %v1311_v9 = vld [vmem:[%s1480_s2 + $0x10] sm:$0xff]  ;;  %v31_v10 = vld [vmem:[%s1478_s0 + $0x38] sm:$0xff]  ;;  %v1323_v11 = vld [vmem:[%s1480_s2 + $0x8] sm:$0xff]  ;;  %vm171_vm2 = vcmask 261120  }
   0x8   :  { %1077 = vmatmul.mubr.msk.f32.vlgmr.msra.gmra.mxu1 %vm41_vm0, %v29_v5  ;;  %1104 = vmatprep.subr.mxu0 %v1237_v8  ;;  %v1333_v12 = vld [vmem:[%s1480_s2] sm:$0xff]  ;;  %v26_v31 = vld [vmem:[%s1478_s0 + $0x10] sm:$0xff]  ;;  %v27_v32 = vld [vmem:[%s1478_s0 + $0x18] sm:$0xff] }
   0x9   :  { %1083 = vmatpush3.msra.mxu1 %v1300_v6  ;;  %1079 = vmatprep.mubr.msk.f32.mxu1 %vm41_vm0, %v30_v7  ;;  %v1361_v13 = vld [vmem:[%s1481_s3] ss:$0 sm:$0xff]  ;;  %v818_v57 = vld [vmem:[%s1482_s4 + $0x18] sm:$0xff]  ;;  %v817_v63 = vld [vmem:[%s1482_s4 + $0x10] sm:$0xff] }
   0xa   :  { %1084 = vmatprep.subr.mxu1 %v1237_v8  ;;  %1105 = vmatpush3.msra.mxu0 %v1300_v6  ;;  %v816_v1 = vld [vmem:[%s1482_s4 + $0x8] sm:$0xff]  ;;  %v815_v2 = vld [vmem:[%s1482_s4] sm:$0xff] }
   0xb   :  { %1085 = vmatpush3.msra.mxu1 %v1311_v9  ;;  %1106 = vmatprep.subr.mxu0 %v1237_v8 }
   0xc   :  { %1080 = vmatmul.mubr.msk.f32.gmra.mxu1 %vm41_vm0, %v31_v10  ;;  %1086 = vmatprep.subr.mxu1 %v1237_v8 }
   0xd   :  { %1087 = vmatpush3.msra.mxu1 %v1323_v11  ;;  %1090 = vmatprep.mubr.msk.f32.mxu1 %vm1238_vm1, %v1237_v8 }
   0xe   :  { %1088 = vmatprep.subr.mxu1 %v1237_v8  ;;  %1107 = vmatpush3.msra.mxu0 %v1311_v9 }
   0xf   :  { %1089 = vmatpush3.msra.mxu1 %v1333_v12  ;;  %1108 = vmatprep.subr.mxu0 %v1237_v8 }
  0x10   :  { %1091 = vmatmul.mubr.f32.vlgmr.msra.gmra.mxu1 %v1237_v8  ;;  %1093 = vmatprep.subr.mxu1 %v1237_v8 }
  0x11   :  { %1094 = vmatpush3.msra.mxu1 %v1300_v6  ;;  %1101 = vmatprep.mubr.msk.f32.mxu1 %vm1238_vm1, %v1237_v8 }
  0x12   :  { %1095 = vmatprep.subr.mxu1 %v1237_v8  ;;  %1109 = vmatpush3.msra.mxu0 %v1323_v11 }
  0x13   :  { %1096 = vmatpush3.msra.mxu1 %v1311_v9  ;;  %1110 = vmatprep.subr.mxu0 %v1237_v8 }
  0x14   :  { %1097 = vmatprep.subr.mxu1 %v1237_v8  ;;  %1111 = vmatpush3.msra.mxu0 %v1333_v12 }
  0x15   :  { %1098 = vmatpush3.msra.mxu1 %v1323_v11  ;;  %1126 = vmatprep.subr.mxu0 %v1237_v8 }
  0x16   :  { %1099 = vmatprep.subr.mxu1 %v1237_v8  ;;  %1073 = vmatprep.mubr.msk.f32.mxu0 %vm41_vm0, %v26_v31 }
  0x17   :  { %1100 = vmatpush3.msra.mxu1 %v1333_v12  ;;  %1074 = vmatmul.mubr.msk.f32.gmra.mxu0 %vm41_vm0, %v27_v32 }
  0x18   :  { %1115 = vmatprep.subr.mxu1 %v1237_v8  ;;  %1112 = vmatprep.mubr.msk.f32.mxu0 %vm1238_vm1, %v1237_v8 }
  0xc6   :  { %v1072_v14 = vpop.f32.mrf.mxu0 }
  0xc7   :  { %v138_v15 = vadd.f32 %v1072_v14, %v1361_v13 }
  0xc8   :  { %v132_v16 = vpop.f32.mrf.mxu0  ;;  %v1078_v17 = vpop.f32.mrf.mxu1 }
  0xc9   :  { %173 = vst.msk [vmem:[#allocation2 + $0x8] sm:$0xff] %vm171_vm2, %v138_v15  ;;  %v133_v18 = vadd.f32 %v1361_v13, %v132_v16  ;;  %v158_v19 = vadd.f32 %v1078_v17, %v1361_v13 }
  0xca   :  { %v152_v20 = vpop.f32.mrf.mxu1 }
  0xcb   :  { %172 = vst.msk [vmem:[#allocation2] sm:$0xff] %vm171_vm2, %v133_v18  ;;  %177 = vst.msk [vmem:[#allocation2 + $0x28] sm:$0xff] %vm171_vm2, %v158_v19  ;;  %v153_v21 = vadd.f32 %v1361_v13, %v152_v20 }
  0xcc   :  { %v1081_v22 = vpop.f32.mrf.mxu1 }
  0xcd   :  { %176 = vst.msk [vmem:[#allocation2 + $0x20] sm:$0xff] %vm171_vm2, %v153_v21  ;;  %v168_v23 = vadd.f32 %v1081_v22, %v1361_v13 }
  0xce   :  { %v162_v24 = vpop.f32.mrf.mxu1 }
  0xcf   :  { %179 = vst.msk [vmem:[#allocation2 + $0x38] sm:$0xff] %vm171_vm2, %v168_v23  ;;  %v163_v25 = vadd.f32 %v1361_v13, %v162_v24 }
  0xd0   :  { %v254_v26 = vpop.f32.mrf.mxu1  ;;  %v262_v33 = vld [vmem:[#allocation2 + $0x8] sm:$0xff] }
  0xd1   :  { %178 = vst.msk [vmem:[#allocation2 + $0x30] sm:$0xff] %vm171_vm2, %v163_v25 }
  0xd2   :  { %v184_v27 = vld [vmem:[#allocation2] sm:$0xff]  ;;  %v1092_v28 = vpop.f32.mrf.mxu1  ;;  %v574_v58 = vld [vmem:[#allocation2 + $0x28] sm:$0xff] }
  0xd3   :  { %v258_v29 = vadd.f32 %v254_v26, %v184_v27 }
  0xd4   :  { %v496_v52 = vld [vmem:[#allocation2 + $0x20] sm:$0xff] }
  0xd5   :  { %1199 = vtanh.f32 %v258_v29 }
  0xd6   :  { %v730_v27 = vld [vmem:[#allocation2 + $0x38] sm:$0xff] }
  0xd7   :  { %v1075_v38 = vpop.f32.mrf.mxu0 }
  0xd8   :  { %v148_v39 = vadd.f32 %v1075_v38, %v1361_v13 }
  0xd9   :  { %v142_v40 = vpop.f32.mrf.mxu0 }
  0xda   :  { %175 = vst.msk [vmem:[#allocation2 + $0x18] sm:$0xff] %vm171_vm2, %v148_v39  ;;  %v143_v41 = vadd.f32 %v1361_v13, %v142_v40 }
  0xdc   :  { %174 = vst.msk [vmem:[#allocation2 + $0x10] sm:$0xff] %vm171_vm2, %v143_v41 }
  0xe1   :  { %v418_v47 = vld [vmem:[#allocation2 + $0x18] sm:$0xff] }
  0xe2   :  { %v1200_v30 = vpop.eup %1199 }
  0xe3   :  { %260 = vst.msk [vmem:[#allocation2] sm:$0xff] %vm171_vm2, %v1200_v30  ;;  %1102 = vmatmul.mubr.msk.f32.vlgmr.msra.gmra.mxu1 %vm171_vm2, %v1200_v30  ;;  %v340_v42 = vld [vmem:[#allocation2 + $0x10] sm:$0xff] }
  0xe4   :  { %1116 = vmatpush3.msra.mxu1 %v1300_v6  ;;  %1123 = vmatprep.mubr.msk.f32.mxu1 %vm1238_vm1, %v1237_v8 }
  0xe5   :  { %1117 = vmatprep.subr.mxu1 %v1237_v8 }
  0xe6   :  { %1118 = vmatpush3.msra.mxu1 %v1311_v9 }
  0xe7   :  { %1119 = vmatprep.subr.mxu1 %v1237_v8 }
  0xe8   :  { %1120 = vmatpush3.msra.mxu1 %v1323_v11 }
  0xe9   :  { %1121 = vmatprep.subr.mxu1 %v1237_v8 }
  0xea   :  { %1122 = vmatpush3.msra.mxu1 %v1333_v12  ;;  %v807_v0 = vld [vmem:[#allocation2] sm:$0xff] }
  0xeb   :  { %1137 = vmatprep.subr.mxu1 %v1237_v8 }
 0x1a3   :  { %v332_v34 = vpop.f32.mrf.mxu1 }
 0x1a4   :  { %v336_v35 = vadd.f32 %v332_v34, %v262_v33 }
 0x1a5   :  { %v1103_v36 = vpop.f32.mrf.mxu1 }
 0x1a6   :  { %1201 = vtanh.f32 %v336_v35 }
 0x1b3   :  { %v1202_v37 = vpop.eup %1201 }
 0x1b4   :  { %338 = vst.msk [vmem:[#allocation2 + $0x8] sm:$0xff] %vm171_vm2, %v1202_v37  ;;  %1113 = vmatmul.mubr.msk.f32.vlgmr.msra.gmra.mxu0 %vm171_vm2, %v1202_v37 }
 0x1b5   :  { %1127 = vmatpush3.msra.mxu0 %v1300_v6  ;;  %1134 = vmatprep.mubr.msk.f32.mxu0 %vm1238_vm1, %v1237_v8 }
 0x1b6   :  { %1128 = vmatprep.subr.mxu0 %v1237_v8 }
 0x1b7   :  { %1129 = vmatpush3.msra.mxu0 %v1311_v9 }
 0x1b8   :  { %1130 = vmatprep.subr.mxu0 %v1237_v8 }
 0x1b9   :  { %1131 = vmatpush3.msra.mxu0 %v1323_v11 }
 0x1ba   :  { %1132 = vmatprep.subr.mxu0 %v1237_v8 }
 0x1bb   :  { %1133 = vmatpush3.msra.mxu0 %v1333_v12  ;;  %v808_v3 = vld [vmem:[#allocation2 + $0x8] sm:$0xff] }
 0x1bc   :  { %1148 = vmatprep.subr.mxu0 %v1237_v8 }
 0x274   :  { %v410_v43 = vpop.f32.mrf.mxu0 }
 0x275   :  { %v414_v44 = vadd.f32 %v410_v43, %v340_v42 }
 0x276   :  { %v1114_v45 = vpop.f32.mrf.mxu0 }
 0x277   :  { %1203 = vtanh.f32 %v414_v44 }
 0x284   :  { %v1204_v46 = vpop.eup %1203 }
 0x285   :  { %416 = vst.msk [vmem:[#allocation2 + $0x10] sm:$0xff] %vm171_vm2, %v1204_v46  ;;  %1124 = vmatmul.mubr.msk.f32.vlgmr.msra.gmra.mxu1 %vm171_vm2, %v1204_v46 }
 0x286   :  { %1138 = vmatpush3.msra.mxu1 %v1300_v6  ;;  %1145 = vmatprep.mubr.msk.f32.mxu1 %vm1238_vm1, %v1237_v8 }
 0x287   :  { %1139 = vmatprep.subr.mxu1 %v1237_v8 }
 0x288   :  { %1140 = vmatpush3.msra.mxu1 %v1311_v9 }
 0x289   :  { %1141 = vmatprep.subr.mxu1 %v1237_v8 }
 0x28a   :  { %1142 = vmatpush3.msra.mxu1 %v1323_v11 }
 0x28b   :  { %1143 = vmatprep.subr.mxu1 %v1237_v8 }
 0x28c   :  { %1144 = vmatpush3.msra.mxu1 %v1333_v12  ;;  %v809_v4 = vld [vmem:[#allocation2 + $0x10] sm:$0xff] }
 0x28d   :  { %1159 = vmatprep.subr.mxu1 %v1237_v8 }
 0x345   :  { %v488_v48 = vpop.f32.mrf.mxu1 }
 0x346   :  { %v492_v49 = vadd.f32 %v488_v48, %v418_v47 }
 0x347   :  { %v1125_v50 = vpop.f32.mrf.mxu1 }
 0x348   :  { %1205 = vtanh.f32 %v492_v49 }
 0x355   :  { %v1206_v51 = vpop.eup %1205 }
 0x356   :  { %494 = vst.msk [vmem:[#allocation2 + $0x18] sm:$0xff] %vm171_vm2, %v1206_v51  ;;  %1135 = vmatmul.mubr.msk.f32.vlgmr.msra.gmra.mxu0 %vm171_vm2, %v1206_v51 }
 0x357   :  { %1149 = vmatpush3.msra.mxu0 %v1300_v6  ;;  %1156 = vmatprep.mubr.msk.f32.mxu0 %vm1238_vm1, %v1237_v8 }
 0x358   :  { %1150 = vmatprep.subr.mxu0 %v1237_v8 }
 0x359   :  { %1151 = vmatpush3.msra.mxu0 %v1311_v9 }
 0x35a   :  { %1152 = vmatprep.subr.mxu0 %v1237_v8 }
 0x35b   :  { %1153 = vmatpush3.msra.mxu0 %v1323_v11 }
 0x35c   :  { %1154 = vmatprep.subr.mxu0 %v1237_v8 }
 0x35d   :  { %1155 = vmatpush3.msra.mxu0 %v1333_v12  ;;  %v810_v5 = vld [vmem:[#allocation2 + $0x18] sm:$0xff] }
 0x35e   :  { %1170 = vmatprep.subr.mxu0 %v818_v57 }
 0x416   :  { %v566_v53 = vpop.f32.mrf.mxu0 }
 0x417   :  { %v570_v54 = vadd.f32 %v566_v53, %v496_v52 }
 0x418   :  { %v1136_v55 = vpop.f32.mrf.mxu0 }
 0x419   :  { %1207 = vtanh.f32 %v570_v54 }
 0x426   :  { %v1208_v56 = vpop.eup %1207 }
 0x427   :  { %572 = vst.msk [vmem:[#allocation2 + $0x20] sm:$0xff] %vm171_vm2, %v1208_v56  ;;  %1146 = vmatmul.mubr.msk.f32.vlgmr.msra.gmra.mxu1 %vm171_vm2, %v1208_v56 }
 0x428   :  { %1160 = vmatpush3.msra.mxu1 %v1300_v6  ;;  %1167 = vmatprep.mubr.msk.f32.mxu1 %vm1238_vm1, %v1237_v8 }
 0x429   :  { %1161 = vmatprep.subr.mxu1 %v1237_v8 }
 0x42a   :  { %1162 = vmatpush3.msra.mxu1 %v1311_v9 }
 0x42b   :  { %1163 = vmatprep.subr.mxu1 %v1237_v8 }
 0x42c   :  { %1164 = vmatpush3.msra.mxu1 %v1323_v11 }
 0x42d   :  { %1165 = vmatprep.subr.mxu1 %v1237_v8  ;;  %v652_v8 = vld [vmem:[#allocation2 + $0x30] sm:$0xff] }
 0x42e   :  { %1166 = vmatpush3.msra.mxu1 %v1333_v12  ;;  %v811_v6 = vld [vmem:[#allocation2 + $0x20] sm:$0xff] }
 0x42f   :  { %v995_v12 = vld [vmem:[%s1483_s5] ss:$0 sm:$0xff]  ;;  %s1239_s5 = smov [#allocation3]  }
 0x430   :  { %s968_s7 = sshll.u32 %s1239_s5, 4  ;;  %s969_s7 = int_to_ptr.vmem [resolvable:$true] %s968_s7 }
 0x431   :  { %s1215_s8 = scalar_lea.vmem %s969_s7, 1024  ;;  %p1220_p1 = scmp.lt.s32.totalorder %s969_s7, %s969_s7 }
 0x432   :  { %p1216_p0 = scmp.ne.s32.totalorder %s969_s7, %s1215_s8  ;;  %p1221_p2 = scmp.lt.s32.totalorder %s1215_s8, %s1215_s8 }
 0x434   :  { %p1222_p3 = por %p1221_p2, %p1220_p1 }
 0x436   :  { %p1223_p4 = pnand %p1222_p3, %p1216_p0 }
 0x4e7   :  { %v644_v59 = vpop.f32.mrf.mxu1 }
 0x4e8   :  { %v648_v60 = vadd.f32 %v644_v59, %v574_v58 }
 0x4e9   :  { %v1147_v61 = vpop.f32.mrf.mxu1 }
 0x4ea   :  { %1209 = vtanh.f32 %v648_v60 }
 0x4f7   :  { %v1210_v62 = vpop.eup %1209 }
 0x4f8   :  { %650 = vst.msk [vmem:[#allocation2 + $0x28] sm:$0xff] %vm171_vm2, %v1210_v62  ;;  %1157 = vmatmul.mubr.msk.f32.vlgmr.msra.gmra.mxu0 %vm171_vm2, %v1210_v62 }
 0x4f9   :  { %1171 = vmatpush3.msra.mxu0 %v818_v57  ;;  %1178 = vmatprep.mubr.msk.f32.mxu0 %vm171_vm2, %v807_v0 }
 0x4fa   :  { %1172 = vmatprep.subr.mxu0 %v817_v63 }
 0x4fb   :  { %1173 = vmatpush3.msra.mxu0 %v817_v63 }
 0x4fc   :  { %1174 = vmatprep.subr.mxu0 %v816_v1 }
 0x4fd   :  { %1175 = vmatpush3.msra.mxu0 %v816_v1 }
 0x4fe   :  { %1176 = vmatprep.subr.mxu0 %v815_v2 }
 0x4ff   :  { %1177 = vmatpush3.msra.mxu0 %v815_v2  ;;  %v812_v7 = vld [vmem:[#allocation2 + $0x28] sm:$0xff] }
 0x500   :  { %1179 = vmatmul.mubr.msk.f32.vlgmr.msra.gmra.mxu0 %vm171_vm2, %v808_v3 }
 0x501   :  { %1181 = vmatprep.mubr.msk.f32.mxu0 %vm171_vm2, %v809_v4 }
 0x504   :  { %1182 = vmatmul.mubr.msk.f32.gmra.mxu0 %vm171_vm2, %v810_v5 }
 0x505   :  { %1184 = vmatprep.mubr.msk.f32.mxu0 %vm171_vm2, %v811_v6 }
 0x508   :  { %1185 = vmatmul.mubr.msk.f32.gmra.mxu0 %vm171_vm2, %v812_v7 }
 0x5b8   :  { %v722_v9 = vpop.f32.mrf.mxu0 }
 0x5b9   :  { %v726_v10 = vadd.f32 %v722_v9, %v652_v8 }
 0x5ba   :  { %v1158_v11 = vpop.f32.mrf.mxu0 }
 0x5bb   :  { %1211 = vtanh.f32 %v726_v10 }
 0x5c0   :  { %v1180_v13 = vpop.f32.mrf.mxu0 }
 0x5c1   :  { %v922_v14 = vadd.f32 %v1180_v13, %v995_v12 }
 0x5c2   :  { %v916_v15 = vpop.f32.mrf.mxu0 }
 0x5c3   :  { %956 = vst [vmem:[#allocation3 + $0x8] sm:$0xff] %v922_v14  ;;  %v917_v16 = vadd.f32 %v995_v12, %v916_v15 }
 0x5c4   :  { %v1183_v17 = vpop.f32.mrf.mxu0 }
 0x5c5   :  { %955 = vst [vmem:[#allocation3] sm:$0xff] %v917_v16  ;;  %v932_v18 = vadd.f32 %v1183_v17, %v995_v12 }
 0x5c6   :  { %v926_v19 = vpop.f32.mrf.mxu0 }
 0x5c7   :  { %958 = vst [vmem:[#allocation3 + $0x18] sm:$0xff] %v932_v18  ;;  %v927_v20 = vadd.f32 %v995_v12, %v926_v19 }
 0x5c8   :  { %v1212_v21 = vpop.eup %1211  ;;  %v1186_v22 = vpop.f32.mrf.mxu0 }
 0x5c9   :  { %728 = vst.msk [vmem:[#allocation2 + $0x30] sm:$0xff] %vm171_vm2, %v1212_v21  ;;  %957 = vst [vmem:[#allocation3 + $0x10] sm:$0xff] %v927_v20  ;;  %v942_v23 = vadd.f32 %v1186_v22, %v995_v12  ;;  %1168 = vmatmul.mubr.msk.f32.vlgmr.msra.gmra.mxu1 %vm171_vm2, %v1212_v21 }
 0x5ca   :  { %v936_v24 = vpop.f32.mrf.mxu0 }
 0x5cb   :  { %960 = vst [vmem:[#allocation3 + $0x28] sm:$0xff] %v942_v23  ;;  %v937_v25 = vadd.f32 %v995_v12, %v936_v24 }
 0x5cd   :  { %959 = vst [vmem:[#allocation3 + $0x20] sm:$0xff] %v937_v25 }
 0x5d0   :  { %v813_v26 = vld [vmem:[#allocation2 + $0x30] sm:$0xff] }
 0x5d1   :  { %1187 = vmatprep.mubr.msk.f32.mxu0 %vm171_vm2, %v813_v26 }
 0x689   :  { %v800_v28 = vpop.f32.mrf.mxu1 }
 0x68a   :  { %v804_v29 = vadd.f32 %v800_v28, %v730_v27 }
 0x68b   :  { %v1169_v30 = vpop.f32.mrf.mxu1 }
 0x68c   :  { %1213 = vtanh.f32 %v804_v29 }
 0x699   :  { %v1214_v31 = vpop.eup %1213 }
 0x69a   :  { %806 = vst.msk [vmem:[#allocation2 + $0x38] sm:$0xff] %vm171_vm2, %v1214_v31 }
 0x6a1   :  { %v814_v32 = vld [vmem:[#allocation2 + $0x38] sm:$0xff] }
 0x6a2   :  { %1188 = vmatmul.mubr.msk.f32.gmra.mxu0 %vm171_vm2, %v814_v32 }
 0x762   :  { %v1189_v33 = vpop.f32.mrf.mxu0 }
 0x763   :  { %v952_v34 = vadd.f32 %v1189_v33, %v995_v12 }
 0x764   :  { %v946_v35 = vpop.f32.mrf.mxu0 }
 0x765   :  { %962 = vst [vmem:[#allocation3 + $0x38] sm:$0xff] %v952_v34  ;;  %v947_v36 = vadd.f32 %v995_v12, %v946_v35 }
 0x767   :  { %961 = vst [vmem:[#allocation3 + $0x30] sm:$0xff] %v947_v36 }
 0x768   :  { %1226 = shalt.err (!%p1223_p4)
}
 0x769   :  { %s1240_s9 = smov 128   ;;  %s1241_s10 = smov 8  }
 0x76a   :  { %974 = dma.vmem_to_hbm [thread:$0]  %s969_s7, 1024, %s1484_s6, [#allocation4], %s1240_s9, %s1240_s9, %s1241_s10  }
 0x76b   :  { %1235 = dma.done.wait [#allocation4], 1024  }
 0x76c   :  { %1236 = vsyncadd [#allocation4], 4294966272 }
 0x76d   :  { %978 = vsyncpa [#allocation4], 1 }

</bundles_post_ra>
